<compile_context>
chip_gen: v7x
topology: tpu7x:2x2x1
jax: 0.10.0
libtpu: 0.0.40
codegen_flags: <defaults>
</compile_context>

<pallas_src>
import jax
import jax.numpy as jnp
from jax import lax
from jax.experimental import pallas as pl
from jax.experimental.pallas import tpu as pltpu

LANES = 128
SUBLANES = 8
DEFAULT_BLOCK_ROWS = 1024     # 1024 x 128 f32 = 512 KiB per pipeline buffer
NUM_CORE_SPLITS = 2           # leading "parallel" axis for v7x's two TensorCores


def _make_kernel(*, total, group, w_pos, w_neg, block_rows, steps_per_split):
    block_elems = block_rows * LANES

    def kernel(res_ref, out_ref):
        c = pl.program_id(0)          # core split ("parallel")
        i = pl.program_id(1)          # row-block step within the split ("arbitrary")

        @pl.when(i == 0)
        def _init():
            out_ref[...] = jnp.zeros_like(out_ref)

        x = res_ref[...].astype(jnp.float32)                  # (block_rows, 128)

        # Global flat element index of every lane in this block.  We use the
        # UN-clamped block id, so duplicated/out-of-range blocks mask to zero.
        row = lax.broadcasted_iota(jnp.int32, x.shape, 0)
        lane = lax.broadcasted_iota(jnp.int32, x.shape, 1)
        g = c * steps_per_split + i
        flat = g * block_elems + row * LANES + lane            # int32 (total < 2**31)

        valid = flat < total
        is_pos = (flat % group) == 0          # column 0 of the (B, K+1) view

        # positives:  -log(sigmoid(x))     = softplus(-x)
        # negatives:  -log(1 - sigmoid(x)) = softplus(x)
        z = jnp.where(is_pos, -x, x)
        sp = jnp.maximum(z, 0.0) + jnp.log1p(jnp.exp(-jnp.abs(z)))
        w = jnp.where(is_pos, jnp.float32(w_pos), jnp.float32(w_neg))
        contrib = jnp.where(valid, sp * w, 0.0)

        # Fold the block into the resident (8,128) accumulator: pure VPU adds.
        out_ref[...] += contrib.reshape(-1, SUBLANES, LANES).sum(axis=0)

    return kernel


def neg_log_loss(res, num_neg_samples, *, block_rows=DEFAULT_BLOCK_ROWS):
    """Pallas implementation of NegLogLoss(num_neg_samples).forward(res)."""
    assert num_neg_samples >= 1
    group = num_neg_samples + 1

    flat = res.reshape(-1)                         # torch .view(-1, K+1) equivalent
    total = flat.shape[0]
    assert total % group == 0, "res size must be divisible by num_neg_samples + 1"
    assert total < 2**31, "flat indices are computed in int32 inside the kernel"
    batch = total // group

    w_pos = 1.0 / batch
    w_neg = 1.0 / (batch * num_neg_samples)

    # Dtype-aware sublane packing (f32 -> 8, bf16 -> 16, int8/fp8 -> 32).
    itemsize = jnp.dtype(res.dtype).itemsize
    sub = max(SUBLANES, 32 // max(1, itemsize))

    # Minimal pad (< sub*128 elements) so the flat vector forms whole native
    # tiles; the pad and any out-of-bounds tail rows are masked in-kernel.
    tile = sub * LANES
    pad = (-total) % tile
    if pad:
        flat = jnp.pad(flat, (0, pad))
    rows = (total + pad) // LANES

    block_rows = max(sub, (min(block_rows, rows) // sub) * sub)
    x2 = flat.reshape(rows, LANES)

    nblocks = pl.cdiv(rows, block_rows)
    nsplit = NUM_CORE_SPLITS if nblocks >= NUM_CORE_SPLITS else 1
    spc = pl.cdiv(nblocks, nsplit)                 # row blocks per core split

    kernel = _make_kernel(total=total, group=group, w_pos=w_pos, w_neg=w_neg,
                          block_rows=block_rows, steps_per_split=spc)

    # Clamp the row-block index so any extra steps of the last core split
    # re-read a valid block; their contribution is masked to zero in-kernel.
    in_spec = pl.BlockSpec(
        (block_rows, LANES),
        lambda c, i: (jnp.minimum(c * spc + i, nblocks - 1), 0))
    out_spec = pl.BlockSpec((SUBLANES, LANES), lambda c, i: (c, 0))

    partial = pl.pallas_call(
        kernel,
        out_shape=jax.ShapeDtypeStruct((nsplit * SUBLANES, LANES), jnp.float32),
        grid=(nsplit, spc),
        in_specs=[in_spec],
        out_specs=out_spec,
        compiler_params=pltpu.CompilerParams(
            dimension_semantics=("parallel", "arbitrary")),
    )(x2)

    # Single tiny cross-lane reduction outside the hot loop.
    return jnp.sum(partial)


def _reference_neg_log_loss(res, num_neg_samples):
    score = jax.nn.sigmoid(res.reshape(-1, num_neg_samples + 1).astype(jnp.float32))
    return jnp.mean(-jnp.log(score[:, 0])
                    - jnp.mean(jnp.log(1.0 - score[:, 1:]), axis=-1))


if __name__ == "__main__":
    key = jax.random.PRNGKey(0)
    k1, k2 = jax.random.split(key)

    # Case 1: num_neg_samples=7 (8-way groups), batch=32 -> flat length 256.
    num_neg1 = 7
    res1 = jax.random.normal(k1, (32 * (num_neg1 + 1),), dtype=jnp.float32)
    out1 = jax.block_until_ready(neg_log_loss(res1, num_neg1))
    ref1 = _reference_neg_log_loss(res1, num_neg1)
    assert jnp.allclose(out1, ref1, atol=1e-5, rtol=1e-5), (out1, ref1)

    # Case 2: bf16 scores, group size 5 (does not divide 128), batch=1000,
    # small block_rows to exercise the multi-block / two-split / masked-tail path.
    num_neg2 = 4
    res2 = jax.random.normal(k2, (1000, num_neg2 + 1),
                             dtype=jnp.float32).astype(jnp.bfloat16)
    out2 = jax.block_until_ready(neg_log_loss(res2, num_neg2, block_rows=16))
    ref2 = _reference_neg_log_loss(res2.astype(jnp.float32), num_neg2)
    assert jnp.allclose(out2, ref2, atol=1e-4, rtol=1e-4), (out2, ref2)

    print("KERNEL_OK")
</pallas_src>

<mosaic_0001>
module attributes {stable_mosaic.version = 11 : i64} {
  func.func @kernel(%arg0: i32, %arg1: i32, %arg2: memref<8x128xf32, #tpu.memory_space<vmem>>, %arg3: memref<8x128xf32, #tpu.memory_space<vmem>>) attributes {dimension_semantics = [#tpu.dimension_semantics<parallel>, #tpu.dimension_semantics<arbitrary>], iteration_bounds = array<i64: 1, 1>, scalar_prefetch = 0 : i64, scratch_operands = 0 : i64, tpu.core_type = #tpu.core_type<tc>, window_params = [{transform_indices = @transform_0, window_bounds = array<i64: 8, 128>}, {transform_indices = @transform_1, window_bounds = array<i64: 8, 128>}]} {
    %c0_i32 = arith.constant 0 : i32
    %0 = arith.cmpi eq, %arg1, %c0_i32 : i32
    %1 = arith.extui %0 : i1 to i32
    %c0_i32_0 = arith.constant 0 : i32
    %2 = arith.cmpi ne, %1, %c0_i32_0 : i32
    scf.if %2 {
      %cst_18 = arith.constant 0.000000e+00 : f32
      %56 = vector.broadcast %cst_18 : f32 to vector<8x128xf32>
      %c0_19 = arith.constant 0 : index
      %c0_20 = arith.constant 0 : index
      %57 = vector.load %arg3[%c0_19, %c0_20] : memref<8x128xf32, #tpu.memory_space<vmem>>, vector<8x128xf32>
      tpu.vector_store %arg3[%c0_19, %c0_20], %56 {strides = array<i32>} : memref<8x128xf32, #tpu.memory_space<vmem>>, vector<8x128xf32>,
    } else {
    }
    %c0 = arith.constant 0 : index
    %c0_1 = arith.constant 0 : index
    %3 = vector.load %arg2[%c0, %c0_1] : memref<8x128xf32, #tpu.memory_space<vmem>>, vector<8x128xf32>
    %4 = tpu.iota {dimensions = array<i32: 0>} : vector<8x128xi32>
    %5 = tpu.iota {dimensions = array<i32: 1>} : vector<8x128xi32>
    %c1_i32 = arith.constant 1 : i32
    %6 = arith.muli %arg0, %c1_i32 : i32
    %7 = arith.addi %6, %arg1 : i32
    %c1024_i32 = arith.constant 1024 : i32
    %8 = arith.muli %7, %c1024_i32 : i32
    %c128_i32 = arith.constant 128 : i32
    %9 = vector.broadcast %c128_i32 : i32 to vector<8x128xi32>
    %10 = arith.muli %4, %9 : vector<8x128xi32>
    %11 = vector.broadcast %8 : i32 to vector<8x128xi32>
    %12 = arith.addi %11, %10 : vector<8x128xi32>
    %13 = arith.addi %12, %5 : vector<8x128xi32>
    %c256_i32 = arith.constant 256 : i32
    %14 = vector.broadcast %c256_i32 : i32 to vector<8x128xi32>
    %15 = arith.cmpi slt, %13, %14 : vector<8x128xi32>
    %c8_i32 = arith.constant 8 : i32
    %c0_i32_2 = arith.constant 0 : i32
    %16 = arith.cmpi eq, %c8_i32, %c0_i32_2 : i32
    %c1_i32_3 = arith.constant 1 : i32
    %17 = arith.select %16, %c1_i32_3, %c8_i32 : i32
    %18 = vector.broadcast %17 : i32 to vector<8x128xi32>
    %19 = arith.remsi %13, %18 : vector<8x128xi32>
    %c0_i32_4 = arith.constant 0 : i32
    %20 = vector.broadcast %c0_i32_4 : i32 to vector<8x128xi32>
    %21 = arith.cmpi ne, %19, %20 : vector<8x128xi32>
    %c0_i32_5 = arith.constant 0 : i32
    %22 = vector.broadcast %c0_i32_5 : i32 to vector<8x128xi32>
    %23 = arith.cmpi slt, %19, %22 : vector<8x128xi32>
    %c0_i32_6 = arith.constant 0 : i32
    %24 = arith.cmpi slt, %17, %c0_i32_6 : i32
    %25 = vector.broadcast %24 : i1 to vector<8x128xi1>
    %26 = vector.broadcast %25 : vector<8x128xi1> to vector<8x128xi1>
    %27 = arith.xori %23, %26 : vector<8x128xi1>
    %28 = arith.andi %27, %21 : vector<8x128xi1>
    %29 = vector.broadcast %17 : i32 to vector<8x128xi32>
    %30 = arith.addi %19, %29 : vector<8x128xi32>
    %31 = arith.select %28, %30, %19 : vector<8x128xi1>, vector<8x128xi32>
    %c0_i32_7 = arith.constant 0 : i32
    %32 = vector.broadcast %c0_i32_7 : i32 to vector<8x128xi32>
    %33 = arith.cmpi eq, %31, %32 : vector<8x128xi32>
    %cst = arith.constant 0.000000e+00 : f32
    %34 = vector.broadcast %cst : f32 to vector<8x128xf32>
    %35 = arith.subf %34, %3 : vector<8x128xf32>
    %36 = arith.select %33, %35, %3 : vector<8x128xi1>, vector<8x128xf32>
    %cst_8 = arith.constant 0.000000e+00 : f32
    %37 = vector.broadcast %cst_8 : f32 to vector<8x128xf32>
    %38 = arith.maximumf %36, %37 : vector<8x128xf32>
    %39 = math.absf %36 : vector<8x128xf32>
    %cst_9 = arith.constant 0.000000e+00 : f32
    %40 = vector.broadcast %cst_9 : f32 to vector<8x128xf32>
    %41 = arith.subf %40, %39 : vector<8x128xf32>
    %42 = math.exp %41 : vector<8x128xf32>
    %43 = math.log1p %42 : vector<8x128xf32>
    %44 = arith.addf %38, %43 : vector<8x128xf32>
    %cst_10 = arith.constant 3.125000e-02 : f32
    %cst_11 = arith.constant 0.00446428591 : f32
    %45 = vector.broadcast %cst_10 : f32 to vector<8x128xf32>
    %46 = vector.broadcast %cst_11 : f32 to vector<8x128xf32>
    %47 = arith.select %33, %45, %46 : vector<8x128xi1>, vector<8x128xf32>
    %48 = arith.mulf %44, %47 : vector<8x128xf32>
    %cst_12 = arith.constant 0.000000e+00 : f32
    %49 = vector.broadcast %cst_12 : f32 to vector<8x128xf32>
    %50 = arith.select %15, %48, %49 : vector<8x128xi1>, vector<8x128xf32>
    %c0_13 = arith.constant 0 : index
    %c0_14 = arith.constant 0 : index
    %51 = vector.load %arg3[%c0_13, %c0_14] : memref<8x128xf32, #tpu.memory_space<vmem>>, vector<8x128xf32>
    %52 = vector.shape_cast %50 : vector<8x128xf32> to vector<1x8x128xf32>
    %cst_15 = arith.constant dense<0.000000e+00> : vector<8x128xf32>
    %53 = vector.multi_reduction <add>, %52, %cst_15 [0] : vector<1x8x128xf32> to vector<8x128xf32>
    %54 = arith.addf %51, %53 : vector<8x128xf32>
    %c0_16 = arith.constant 0 : index
    %c0_17 = arith.constant 0 : index
    %55 = vector.load %arg3[%c0_16, %c0_17] : memref<8x128xf32, #tpu.memory_space<vmem>>, vector<8x128xf32>
    tpu.vector_store %arg3[%c0_16, %c0_17], %54 {strides = array<i32>} : memref<8x128xf32, #tpu.memory_space<vmem>>, vector<8x128xf32>,
    return
  }
  func.func @transform_0(%arg0: i32, %arg1: i32) -> (i32, i32) {
    %c1_i32 = arith.constant 1 : i32
    %0 = arith.muli %arg0, %c1_i32 : i32
    %1 = arith.addi %0, %arg1 : i32
    %c0_i32 = arith.constant 0 : i32
    %2 = arith.minsi %1, %c0_i32 : i32
    %c0_i32_0 = arith.constant 0 : i32
    %c0_i32_1 = arith.constant 0 : i32
    return %2, %c0_i32_0 : i32, i32
  }
  func.func @transform_1(%arg0: i32, %arg1: i32) -> (i32, i32) {
    %c0_i32 = arith.constant 0 : i32
    %c0_i32_0 = arith.constant 0 : i32
    return %arg0, %c0_i32 : i32, i32
  }
}

</mosaic_0001>

<bundles_post_ra>
// kernel: tpu_custom_call.1
= control target key start
LH: loop header
LB: loop body
LE: loop exit
PB: predicated region body
PF: predicated region fallthrough
CT: control target
= control target key end

     0   :  { %6 = vsyncpa [#allocation3], 0  ;;  %s202_s0 = inlined_call_operand.hbm [shape: f32[8,128], index: 0, kind: input, shape index: {}]   ;;  %s203_s1 = inlined_call_operand.hbm [shape: f32[8,128], index: 1, kind: output, shape index: {}]  }
   0x1   :  { %7 = vsyncpa [#allocation4], 0  ;;  %s157_s6 = smov [#allocation2]   ;;  %s109_s10 = scalar_lea.hbm %s202_s0, 128 }
   0x2   :  { %s19_s7 = sshll.u32 %s157_s6, 4  ;;  %p110_p0 = scmp.ne.s32.totalorder %s202_s0, %s109_s10  ;;  %s20_s7 = int_to_ptr.vmem [resolvable:$true] %s19_s7 }
   0x3   :  { %p113_p1 = scmp.lt.u32.totalorder %s109_s10, %s202_s0 }
   0x5   :  { %p115_p2 = pnand %p113_p1, %p110_p0 }
   0x7   :  { %118 = shalt.err (!%p115_p2)
}
   0x8   :  { %s119_s15 = scalar_lea.vmem %s20_s7, 128  ;;  %p124_p4 = scmp.lt.s32.totalorder %s20_s7, %s20_s7 }
   0x9   :  { %p120_p3 = scmp.ne.s32.totalorder %s20_s7, %s119_s15  ;;  %p125_p5 = scmp.lt.s32.totalorder %s119_s15, %s119_s15 }
   0xb   :  { %p126_p6 = por %p125_p5, %p124_p4 }
   0xd   :  { %p127_p7 = pnand %p126_p6, %p120_p3 }
   0xf   :  { %130 = shalt.err (!%p127_p7)
}
  0x10   :  { %22 = dma.hbm_to_vmem [thread:$0]  %s202_s0, 128, %s20_s7, [#allocation3]  }
  0x11   :  { %153 = dma.done.wait [#allocation3], 128  }
  0x12   :  { %154 = vsyncadd [#allocation3], 4294967168  ;;  %v35_v0 = vlaneseq  ;;  %v34_v8 = vld [vmem:[#allocation2] sm:$0xff]  ;;  %v158_v29 = vmov 0.004464286   ;;  %s159_s0 = smov [#allocation5]  }
  0x13   :  { %v59_v12 = vsub.f32 0.0, %v34_v8  ;;  %s89_s18 = sshll.u32 %s159_s0, 4  ;;  %s90_s18 = int_to_ptr.vmem [resolvable:$true] %s89_s18 }
  0x14   :  { %v36_v1 = vshrl.u32 %v35_v0, 7  ;;  %v38_v2 = vand.u32 127, %v35_v0  ;;  %s131_s19 = scalar_lea.vmem %s90_s18, 128  ;;  %p136_p9 = scmp.lt.s32.totalorder %s90_s18, %s90_s18 }
  0x15   :  { %p132_p8 = scmp.ne.s32.totalorder %s90_s18, %s131_s19  ;;  %p137_p10 = scmp.lt.s32.totalorder %s131_s19, %s131_s19 }
  0x16   :  { %v41_v3 = vmul.u32 128, %v36_v1 }
  0x17   :  { %p138_p11 = por %p137_p10, %p136_p9 }
  0x18   :  { %v44_v4 = vadd.s32 %v41_v3, %v38_v2 }
  0x19   :  { %p139_p12 = pnand %p138_p11, %p132_p8 }
  0x1a   :  { %v47_v5 = vsub.s32 0, %v44_v4  ;;  %vm46_vm0 = vcmp.lt.s32.totalorder %v44_v4, 0  ;;  %vm45_vm6 = vcmp.lt.s32.totalorder %v44_v4, 256 }
  0x1c   :  { %v100_v6 = vmin.u32 %v47_v5, %v44_v4 }
  0x1e   :  { %v50_v7 = vand.u32 7, %v100_v6 }
  0x20   :  { %v51_v9 = vsub.s32 0, %v50_v7 }
  0x22   :  { %v52_v10 = vsel %vm46_vm0, %v51_v9, %v50_v7 }
  0x23   :  { %vm53_vm1 = vcmp.ne.s32.totalorder %v52_v10, 0  ;;  %vm54_vm2 = vcmp.lt.s32.totalorder %v52_v10, 0  ;;  %v56_v11 = vadd.s32 8, %v52_v10 }
  0x24   :  { %vm55_vm3 = vmand %vm54_vm2, %vm53_vm1 }
  0x25   :  { %v57_v13 = vsel %vm55_vm3, %v56_v11, %v52_v10 }
  0x26   :  { %vm182_vm4 = vcmp.eq.s32.totalorder %v57_v13, 0 }
  0x27   :  { %v60_v15 = vsel %vm182_vm4, %v59_v12, %v34_v8  ;;  %v76_v30 = vsel %vm182_vm4, 0.03125, %v158_v29 }
  0x28   :  { %v62_v16 = vand.u32 2147483647, %v60_v15  ;;  %v61_v26 = vmax.f32 %v60_v15, 0.0 }
  0x2a   :  { %v63_v17 = vsub.f32 0.0, %v62_v16 }
  0x2c   :  { %v64_v18 = vmul.f32 1.442695, %v63_v17 }
  0x2e   :  { %105 = vpow2.f32 %v64_v18 }
  0x38   :  { %v106_v19 = vpop.eup %105 }
  0x39   :  { %v66_v20 = vadd.f32 1.0, %v106_v19  ;;  %v69_v21 = vmul.f32 -0.5, %v106_v19  ;;  %v72_v23 = vand.u32 2147483647, %v106_v19 }
  0x3b   :  { %107 = vlog2.f32 %v66_v20  ;;  %v70_v22 = vadd.f32 1.0, %v69_v21  ;;  %vm73_vm5 = vcmp.lt.f32.partialorder %v72_v23, 0.0004427343 }
  0x3d   :  { %v71_v24 = vmul.f32 %v106_v19, %v70_v22 }
  0x45   :  { %v108_v25 = vpop.eup %107 }
  0x46   :  { %v68_v27 = vmul.f32 0.6931472, %v108_v25 }
  0x48   :  { %v74_v28 = vsel %vm73_vm5, %v71_v24, %v68_v27 }
  0x49   :  { %v75_v31 = vadd.f32 %v74_v28, %v61_v26 }
  0x4b   :  { %v77_v32 = vmul.f32 %v76_v30, %v75_v31 }
  0x4d   :  { %v78_v33 = vsel %vm45_vm6, %v77_v32, 0.0 }
  0x4e   :  { %82 = vst [vmem:[#allocation5] sm:$0xff] %v78_v33 }
  0x4f   :  { %142 = shalt.err (!%p139_p12)
}
  0x50   :  { %s143_s22 = scalar_lea.hbm %s203_s1, 128 }
  0x51   :  { %p144_p13 = scmp.ne.s32.totalorder %s203_s1, %s143_s22  ;;  %p147_p0 = scmp.lt.u32.totalorder %s143_s22, %s203_s1 }
  0x53   :  { %p149_p1 = pnand %p147_p0, %p144_p13 }
  0x55   :  { %152 = shalt.err (!%p149_p1)
}
  0x56   :  { %92 = dma.vmem_to_hbm [thread:$0]  %s90_s18, 128, %s203_s1, [#allocation4]  }
  0x57   :  { %155 = dma.done.wait [#allocation4], 128  }
  0x58   :  { %156 = vsyncadd [#allocation4], 4294967168 }
  0x59   :  { %96 = vsyncpa [#allocation3], 1 }
  0x5a   :  { %97 = vsyncpa [#allocation4], 1 }

</bundles_post_ra>
